<compile_context>
chip_gen: v7x
topology: tpu7x:2x2x1
jax: 0.10.0
libtpu: 0.0.40
codegen_flags: <defaults>
</compile_context>

<pallas_src>
import numpy as np
import jax
import jax.numpy as jnp
from jax.experimental import pallas as pl
from jax.experimental.pallas import tpu as pltpu

# Module constants
DENSE_L = 20          # dense_sampling_L
STD = 0.4             # gaussian_sampling_std
NUM_ADC = 4           # num_of_adc_p
L_TILDE = 4           # num_samples_L_tilde

IN_COLS = NUM_ADC * DENSE_L    # 80
OUT_COLS = NUM_ADC * L_TILDE   # 16


def sampling_kernel(x_ref, g_ref, o_ref):
    """x_ref: (bB, 80), g_ref: (80, 16) block-diagonal Gaussian, o_ref: (bB, 16)."""
    o_ref[...] = jnp.dot(x_ref[...], g_ref[...], preferred_element_type=jnp.float32)


def _round_up(n, m):
    return ((n + m - 1) // m) * m


def _build_block_diag_gaussian(weight):
    """(80, 16) block-diagonal Gaussian matrix, built with plain jnp (f32)."""
    t = jnp.arange(1, DENSE_L + 1, dtype=jnp.float32)[:, None]       # (20, 1)
    w = weight.astype(jnp.float32)[None, :]                           # (1, 4)
    g = jnp.exp(-((t - w) ** 2) / (STD * STD))                        # (20, 4)
    # Place g on the diagonal blocks, exact zeros elsewhere.
    eye = jnp.eye(NUM_ADC, dtype=jnp.float32)                         # (4, 4)
    g_bd = (eye[:, None, :, None] * g[None, :, None, :]).reshape(IN_COLS, OUT_COLS)
    return g_bd


def sampling_forward(x, weight, block_b=2048):
    """x: (B, 80) -> (B, 16), same column ordering out[:, v*L_tilde + k] as the reference."""
    B = x.shape[0]
    assert x.shape[1] == IN_COLS
    x = x.astype(jnp.float32)

    g_bd = _build_block_diag_gaussian(weight)                         # (80, 16)

    # Tile size: large for HBM-roofline amortization, multiple of 8, capped at B.
    bb = min(block_b, _round_up(B, 8))
    bb = _round_up(bb, 8)
    grid = pl.cdiv(B, bb)
    Bp = grid * bb
    if Bp != B:
        x = jnp.pad(x, ((0, Bp - B), (0, 0)))

    out = pl.pallas_call(
        sampling_kernel,
        out_shape=jax.ShapeDtypeStruct((Bp, OUT_COLS), jnp.float32),
        grid=(grid,),
        in_specs=[
            pl.BlockSpec((bb, IN_COLS), lambda i: (i, 0)),
            pl.BlockSpec((IN_COLS, OUT_COLS), lambda i: (0, 0)),       # VMEM-resident G
        ],
        out_specs=pl.BlockSpec((bb, OUT_COLS), lambda i: (i, 0)),
        compiler_params=pltpu.CompilerParams(dimension_semantics=("parallel",)),
    )(x, g_bd)
    return out[:B]


def reference_numpy(x, weight):
    """Direct transcription of the PyTorch forward (float64)."""
    x = np.asarray(x, dtype=np.float64)
    w = np.asarray(weight, dtype=np.float64)
    B = x.shape[0]
    out = np.zeros((B, L_TILDE * NUM_ADC), dtype=np.float64)
    t = np.arange(1, DENSE_L + 1, dtype=np.float64)
    for v, j in enumerate(range(0, DENSE_L * NUM_ADC, DENSE_L)):
        for k in range(L_TILDE):
            out[:, v * L_TILDE + k] = np.sum(
                x[:, j:j + DENSE_L] * np.exp(-(t - w[k]) ** 2 / STD ** 2), axis=1)
    return out


if __name__ == "__main__":
    key = jax.random.PRNGKey(0)
    B = 16
    x = jax.random.normal(key, (B, IN_COLS), dtype=jnp.float32)

    # Deterministic parameter init, same as the module's __init__:
    # weight = arange(num_samples_L_tilde, dense_sampling_L, num_samples_L_tilde)
    weight = jnp.arange(L_TILDE, DENSE_L, L_TILDE, dtype=jnp.float32)  # [4., 8., 12., 16.]

    out = sampling_forward(x, weight)
    out = jax.block_until_ready(out)

    ref = reference_numpy(np.asarray(x), np.asarray(weight))
    np.testing.assert_allclose(np.asarray(out), ref, rtol=1e-4, atol=1e-5)

    print("KERNEL_OK")
</pallas_src>

<mosaic_0001>
module attributes {stable_mosaic.version = 11 : i64} {
  func.func @sampling_kernel(%arg0: i32, %arg1: memref<16x80xf32, #tpu.memory_space<vmem>>, %arg2: memref<80x16xf32, #tpu.memory_space<vmem>>, %arg3: memref<16x16xf32, #tpu.memory_space<vmem>>) attributes {dimension_semantics = [#tpu.dimension_semantics<parallel>], iteration_bounds = array<i64: 1>, scalar_prefetch = 0 : i64, scratch_operands = 0 : i64, tpu.core_type = #tpu.core_type<tc>, window_params = [{transform_indices = @transform_0, window_bounds = array<i64: 16, 80>}, {pipeline_mode = #tpu.pipeline_mode<synchronous>, transform_indices = @transform_1, window_bounds = array<i64: 80, 16>}, {transform_indices = @transform_2, window_bounds = array<i64: 16, 16>}]} {
    %c0 = arith.constant 0 : index
    %c0_0 = arith.constant 0 : index
    %0 = vector.load %arg1[%c0, %c0_0] : memref<16x80xf32, #tpu.memory_space<vmem>>, vector<16x80xf32>
    %c0_1 = arith.constant 0 : index
    %c0_2 = arith.constant 0 : index
    %1 = vector.load %arg2[%c0_1, %c0_2] : memref<80x16xf32, #tpu.memory_space<vmem>>, vector<80x16xf32>
    %cst = arith.constant dense<0.000000e+00> : vector<16x16xf32>
    %2 = tpu.matmul %0, %1, %cst {dimension_numbers = #tpu.dot_dimension_numbers<[1], [0], [0], [1], [0, 0, 1, 1], [], []>} : vector<16x80xf32>, vector<80x16xf32>, vector<16x16xf32> -> vector<16x16xf32>
    %c0_3 = arith.constant 0 : index
    %c0_4 = arith.constant 0 : index
    %3 = vector.load %arg3[%c0_3, %c0_4] : memref<16x16xf32, #tpu.memory_space<vmem>>, vector<16x16xf32>
    tpu.vector_store %arg3[%c0_3, %c0_4], %2 {strides = array<i32>} : memref<16x16xf32, #tpu.memory_space<vmem>>, vector<16x16xf32>,
    return
  }
  func.func @transform_0(%arg0: i32) -> (i32, i32) {
    %c0_i32 = arith.constant 0 : i32
    %c0_i32_0 = arith.constant 0 : i32
    return %arg0, %c0_i32 : i32, i32
  }
  func.func @transform_1(%arg0: i32) -> (i32, i32) {
    %c0_i32 = arith.constant 0 : i32
    %c0_i32_0 = arith.constant 0 : i32
    %c0_i32_1 = arith.constant 0 : i32
    return %c0_i32, %c0_i32_0 : i32, i32
  }
  func.func @transform_2(%arg0: i32) -> (i32, i32) {
    %c0_i32 = arith.constant 0 : i32
    %c0_i32_0 = arith.constant 0 : i32
    return %arg0, %c0_i32 : i32, i32
  }
}

</mosaic_0001>

<bundles_post_ra>
// kernel: tpu_custom_call.1
= control target key start
LH: loop header
LB: loop body
LE: loop exit
PB: predicated region body
PF: predicated region fallthrough
CT: control target
= control target key end

     0   :  { %vm24_vm0 = vcmask 654336   ;;  %s277_s0 = inlined_call_operand.vmem [shape: f32[16,80], index: 0, kind: input, shape index: {}]   ;;  %s278_s1 = inlined_call_operand.vmem [shape: f32[80,16], index: 1, kind: input, shape index: {}]   ;;  %s279_s2 = inlined_call_operand.hbm [shape: f32[16,16], index: 2, kind: output, shape index: {}]  }
   0x1   :  { %v14_v0 = vld [vmem:[%s278_s1] sm:$0xff]  ;;  %v15_v1 = vld [vmem:[%s278_s1 + $0x8] sm:$0xff]  ;;  %v16_v2 = vld [vmem:[%s278_s1 + $0x10] sm:$0xff] }
   0x2   :  { %v162_v3 = vpack.c.bf16 %v15_v1, %v14_v0  ;;  %v17_v4 = vld [vmem:[%s278_s1 + $0x18] sm:$0xff]  ;;  %v18_v6 = vld [vmem:[%s278_s1 + $0x20] sm:$0xff]  ;;  %v19_v7 = vld [vmem:[%s278_s1 + $0x28] sm:$0xff] }
   0x3   :  { %v166_v5 = vpack.c.bf16 %v17_v4, %v16_v2  ;;  %v12_v8 = vld [vmem:[%s277_s0] sm:$0xff] }
   0x4   :  { %163 = vmatprep.subr.bf16.mxu0 %v162_v3  ;;  %159 = vmatprep.mubr.msk.f32.mxu0 %vm24_vm0, %v12_v8 }
   0x5   :  { %165 = vmatpush3.bf16.msra.mxu0 %v162_v3 }
   0x6   :  { %7 = vsyncpa [#allocation3], 0  ;;  %167 = vmatprep.subr.bf16.mxu0 %v166_v5  ;;  %v170_v9 = vpack.c.bf16 %v19_v7, %v18_v6  ;;  %v20_v10 = vld [vmem:[%s278_s1 + $0x30] sm:$0xff]  ;;  %v21_v11 = vld [vmem:[%s278_s1 + $0x38] sm:$0xff]  ;;  %s209_s5 = smov [#allocation2]   ;;  %vm106_vm1 = vcmask 130048  }
   0x7   :  { %v174_v12 = vpack.c.bf16 %v21_v11, %v20_v10  ;;  %v22_v13 = vld [vmem:[%s278_s1 + $0x40] sm:$0xff]  ;;  %v23_v14 = vld [vmem:[%s278_s1 + $0x48] sm:$0xff]  ;;  %s114_s6 = sshll.u32 %s209_s5, 4  ;;  %s115_s6 = int_to_ptr.vmem [resolvable:$true] %s114_s6 }
   0x8   :  { %v178_v15 = vpack.c.bf16 %v23_v14, %v22_v13  ;;  %v13_v16 = vld [vmem:[%s277_s0 + $0x8] sm:$0xff]  ;;  %s185_s1 = scalar_lea.vmem %s115_s6, 256  ;;  %p190_p1 = scmp.lt.s32.totalorder %s115_s6, %s115_s6 }
   0x9   :  { %169 = vmatpush3.bf16.msra.mxu0 %v166_v5  ;;  %p186_p0 = scmp.ne.s32.totalorder %s115_s6, %s185_s1  ;;  %p191_p2 = scmp.lt.s32.totalorder %s185_s1, %s185_s1 }
   0xa   :  { %171 = vmatprep.subr.bf16.mxu0 %v170_v9 }
   0xb   :  { %p192_p3 = por %p191_p2, %p190_p1 }
   0xd   :  { %173 = vmatpush3.bf16.msra.mxu0 %v170_v9  ;;  %p193_p4 = pnand %p192_p3, %p186_p0 }
   0xe   :  { %175 = vmatprep.subr.bf16.mxu0 %v174_v12 }
  0x11   :  { %177 = vmatpush3.bf16.msra.mxu0 %v174_v12 }
  0x12   :  { %179 = vmatprep.subr.bf16.mxu0 %v178_v15 }
  0x15   :  { %181 = vmatpush3.bf16.msra.mxu0 %v178_v15 }
  0x18   :  { %160 = vmatmul.mubr.msk.f32.vlgmr.msra.gmra.mrb[0].mxu0 %vm24_vm0, %v13_v16 }
  0xeb   :  { %v161_v17 = vpop.f32.mrb[0].mxu0 }
  0xec   :  { %108 = vst.msk [vmem:[#allocation2 + $0x8] sm:$0xff] %vm106_vm1, %v161_v17  ;;  %v97_v18 = vpop.f32.mrb[1].mxu0 }
  0xed   :  { %107 = vst.msk [vmem:[#allocation2] sm:$0xff] %vm106_vm1, %v97_v18 }
  0xee   :  { %196 = shalt.err (!%p193_p4)
}
  0xef   :  { %s197_s0 = scalar_lea.hbm %s279_s2, 256 }
  0xf0   :  { %p198_p5 = scmp.ne.s32.totalorder %s279_s2, %s197_s0  ;;  %p201_p6 = scmp.lt.u32.totalorder %s197_s0, %s279_s2 }
  0xf2   :  { %p203_p7 = pnand %p201_p6, %p198_p5 }
  0xf4   :  { %206 = shalt.err (!%p203_p7)
}
  0xf5   :  { %s210_s13 = smov 128   ;;  %s211_s14 = smov 8  }
  0xf6   :  { %120 = dma.vmem_to_hbm [thread:$0]  %s115_s6, 256, %s279_s2, [#allocation3], %s210_s13, %s210_s13, %s211_s14  }
  0xf7   :  { %207 = dma.done.wait [#allocation3], 256  }
  0xf8   :  { %208 = vsyncadd [#allocation3], 4294967040 }
  0xf9   :  { %124 = vsyncpa [#allocation3], 1 }

</bundles_post_ra>
